<compile_context>
chip_gen: v6e
topology: v6e:2x2x1
jax: 0.10.0
libtpu: 0.0.40
codegen_flags: <defaults>
</compile_context>

<pallas_src>
import jax
import jax.numpy as jnp
from jax.experimental import pallas as pl
from jax.experimental.pallas import tpu as pltpu

LANE = 128          # padded width of every feature axis
OUT_FEATURES = 10   # real output width (softmax classes)
NEG_INF_BIAS = -1e30


def _silu(x):
    # exact SiLU: x * sigmoid(x); kept as an exact divide (see header note).
    return x * (1.0 / (1.0 + jnp.exp(-x)))


def mlp_kernel(x_ref, w1_ref, b1_ref, w2_ref, b2_ref, w3_ref, b3_ref, o_ref):
    # Whole problem fits in VMEM: three 128-wide matmuls + SiLU + row softmax.
    x = x_ref[...]

    # biases read once; (1, 128) rows broadcast implicitly against (B, 128).
    b1 = b1_ref[...]
    b2 = b2_ref[...]
    b3 = b3_ref[...]

    h1 = jnp.dot(x, w1_ref[...], preferred_element_type=jnp.float32) + b1
    h1 = _silu(h1)   # padded lanes: SiLU(0) = 0, stays zero for next layer

    h2 = jnp.dot(h1, w2_ref[...], preferred_element_type=jnp.float32) + b2
    h2 = _silu(h2)

    logits = jnp.dot(h2, w3_ref[...], preferred_element_type=jnp.float32) + b3
    # padded logit lanes carry bias -1e30 -> exp underflows to exactly 0, so
    # they contribute nothing to max/sum; single full-width XLU reduces.
    m = jnp.max(logits, axis=1, keepdims=True)
    e = jnp.exp(logits - m)
    denom = jnp.sum(e, axis=1, keepdims=True)
    # exact reciprocal for the final normalization (row-sum-to-1 @ 1e-5).
    o_ref[...] = (e * pl.reciprocal(denom, approx=False)).astype(o_ref.dtype)


def init_params(key):
    """PyTorch-style deterministic init: U(-1/sqrt(fan_in), 1/sqrt(fan_in))."""
    dims = [(100, 50), (50, 20), (20, 10)]
    params = []
    for i, (fin, fout) in enumerate(dims):
        kw, kb = jax.random.split(jax.random.fold_in(key, i))
        bound = 1.0 / (fin ** 0.5)
        w = jax.random.uniform(kw, (fin, fout), jnp.float32, -bound, bound)
        b = jax.random.uniform(kb, (1, fout), jnp.float32, -bound, bound)
        params += [w, b]
    return tuple(params)


def pad_params(params):
    """Pad every weight/bias to 128-wide tiles (done once, outside the kernel).

    Hidden layers are zero-padded on both sides (zeros contribute nothing and
    SiLU(0)=0 keeps padded lanes at zero). The final bias's padded columns are
    set to -1e30 so padded logits vanish under softmax.
    """
    w1, b1, w2, b2, w3, b3 = params

    def pad_w(w):
        return jnp.pad(w, ((0, LANE - w.shape[0]), (0, LANE - w.shape[1])))

    def pad_b(b, fill=0.0):
        return jnp.pad(b, ((0, 0), (0, LANE - b.shape[1])), constant_values=fill)

    return (pad_w(w1), pad_b(b1),
            pad_w(w2), pad_b(b2),
            pad_w(w3), pad_b(b3, fill=NEG_INF_BIAS))


def sample_forward(x, padded_params, out_features=OUT_FEATURES):
    w1, b1, w2, b2, w3, b3 = padded_params
    B, F = x.shape
    # zero-pad the input features to the 128-lane tile (tiny XLA op, once per call)
    x_p = jnp.pad(x, ((0, 0), (0, LANE - F)))

    cost = pl.CostEstimate(
        flops=2 * B * LANE * LANE * 3,
        transcendentals=3 * B * LANE,
        bytes_accessed=4 * (2 * B * LANE + 3 * (LANE * LANE + LANE)),
    )

    out_padded = pl.pallas_call(
        mlp_kernel,
        out_shape=jax.ShapeDtypeStruct((B, LANE), jnp.float32),
        in_specs=[pl.BlockSpec(memory_space=pltpu.MemorySpace.VMEM)] * 7,
        out_specs=pl.BlockSpec(memory_space=pltpu.MemorySpace.VMEM),
        cost_estimate=cost,
    )(x_p, w1, b1, w2, b2, w3, b3)
    # lane-dense (B, 128) store inside the kernel; slice the real classes here.
    return out_padded[:, :out_features]


def reference_forward(x, params):
    w1, b1, w2, b2, w3, b3 = params
    h1 = x @ w1 + b1
    h1 = h1 * jax.nn.sigmoid(h1)
    h2 = h1 @ w2 + b2
    h2 = h2 * jax.nn.sigmoid(h2)
    logits = h2 @ w3 + b3
    return jax.nn.softmax(logits, axis=1)


if __name__ == "__main__":
    key = jax.random.PRNGKey(0)
    kx, kp = jax.random.split(key)
    x = jax.random.normal(kx, (32, 100), dtype=jnp.float32)
    params = init_params(kp)
    padded_params = pad_params(params)

    out = sample_forward(x, padded_params)
    out = jax.block_until_ready(out)

    ref = reference_forward(x, params)
    assert out.shape == (32, 10)
    assert jnp.allclose(out, ref, atol=1e-5, rtol=1e-5), "mismatch vs reference"
    assert jnp.allclose(jnp.sum(out, axis=1), 1.0, atol=1e-5), "softmax rows must sum to 1"

    print("KERNEL_OK")
</pallas_src>

<mosaic_0001>
module attributes {stable_mosaic.version = 11 : i64} {
  func.func @mlp_kernel(%arg0: memref<32x128xf32, #tpu.memory_space<vmem>>, %arg1: memref<128x128xf32, #tpu.memory_space<vmem>>, %arg2: memref<1x128xf32, #tpu.memory_space<vmem>>, %arg3: memref<128x128xf32, #tpu.memory_space<vmem>>, %arg4: memref<1x128xf32, #tpu.memory_space<vmem>>, %arg5: memref<128x128xf32, #tpu.memory_space<vmem>>, %arg6: memref<1x128xf32, #tpu.memory_space<vmem>>, %arg7: memref<32x128xf32, #tpu.memory_space<vmem>>) attributes {dimension_semantics = [], scalar_prefetch = 0 : i64, scratch_operands = 0 : i64, tpu.core_type = #tpu.core_type<tc>} {
    %c0 = arith.constant 0 : index
    %c0_0 = arith.constant 0 : index
    %0 = vector.load %arg0[%c0, %c0_0] : memref<32x128xf32, #tpu.memory_space<vmem>>, vector<32x128xf32>
    %c0_1 = arith.constant 0 : index
    %c0_2 = arith.constant 0 : index
    %1 = vector.load %arg2[%c0_1, %c0_2] : memref<1x128xf32, #tpu.memory_space<vmem>>, vector<1x128xf32>
    %c0_3 = arith.constant 0 : index
    %c0_4 = arith.constant 0 : index
    %2 = vector.load %arg4[%c0_3, %c0_4] : memref<1x128xf32, #tpu.memory_space<vmem>>, vector<1x128xf32>
    %c0_5 = arith.constant 0 : index
    %c0_6 = arith.constant 0 : index
    %3 = vector.load %arg6[%c0_5, %c0_6] : memref<1x128xf32, #tpu.memory_space<vmem>>, vector<1x128xf32>
    %c0_7 = arith.constant 0 : index
    %c0_8 = arith.constant 0 : index
    %4 = vector.load %arg1[%c0_7, %c0_8] : memref<128x128xf32, #tpu.memory_space<vmem>>, vector<128x128xf32>
    %cst = arith.constant dense<0.000000e+00> : vector<32x128xf32>
    %5 = tpu.matmul %0, %4, %cst {dimension_numbers = #tpu.dot_dimension_numbers<[1], [0], [0], [1], [0, 0, 1, 1], [], []>} : vector<32x128xf32>, vector<128x128xf32>, vector<32x128xf32> -> vector<32x128xf32>
    %6 = vector.broadcast %1 : vector<1x128xf32> to vector<32x128xf32>
    %7 = arith.addf %5, %6 : vector<32x128xf32>
    %cst_9 = arith.constant 0.000000e+00 : f32
    %8 = vector.broadcast %cst_9 : f32 to vector<32x128xf32>
    %9 = arith.subf %8, %7 : vector<32x128xf32>
    %10 = math.exp %9 : vector<32x128xf32>
    %cst_10 = arith.constant 1.000000e+00 : f32
    %11 = vector.broadcast %cst_10 : f32 to vector<32x128xf32>
    %12 = arith.addf %11, %10 : vector<32x128xf32>
    %cst_11 = arith.constant 1.000000e+00 : f32
    %13 = vector.broadcast %cst_11 : f32 to vector<32x128xf32>
    %14 = arith.divf %13, %12 : vector<32x128xf32>
    %15 = arith.mulf %7, %14 : vector<32x128xf32>
    %c0_12 = arith.constant 0 : index
    %c0_13 = arith.constant 0 : index
    %16 = vector.load %arg3[%c0_12, %c0_13] : memref<128x128xf32, #tpu.memory_space<vmem>>, vector<128x128xf32>
    %cst_14 = arith.constant dense<0.000000e+00> : vector<32x128xf32>
    %17 = tpu.matmul %15, %16, %cst_14 {dimension_numbers = #tpu.dot_dimension_numbers<[1], [0], [0], [1], [0, 0, 1, 1], [], []>} : vector<32x128xf32>, vector<128x128xf32>, vector<32x128xf32> -> vector<32x128xf32>
    %18 = vector.broadcast %2 : vector<1x128xf32> to vector<32x128xf32>
    %19 = arith.addf %17, %18 : vector<32x128xf32>
    %cst_15 = arith.constant 0.000000e+00 : f32
    %20 = vector.broadcast %cst_15 : f32 to vector<32x128xf32>
    %21 = arith.subf %20, %19 : vector<32x128xf32>
    %22 = math.exp %21 : vector<32x128xf32>
    %cst_16 = arith.constant 1.000000e+00 : f32
    %23 = vector.broadcast %cst_16 : f32 to vector<32x128xf32>
    %24 = arith.addf %23, %22 : vector<32x128xf32>
    %cst_17 = arith.constant 1.000000e+00 : f32
    %25 = vector.broadcast %cst_17 : f32 to vector<32x128xf32>
    %26 = arith.divf %25, %24 : vector<32x128xf32>
    %27 = arith.mulf %19, %26 : vector<32x128xf32>
    %c0_18 = arith.constant 0 : index
    %c0_19 = arith.constant 0 : index
    %28 = vector.load %arg5[%c0_18, %c0_19] : memref<128x128xf32, #tpu.memory_space<vmem>>, vector<128x128xf32>
    %cst_20 = arith.constant dense<0.000000e+00> : vector<32x128xf32>
    %29 = tpu.matmul %27, %28, %cst_20 {dimension_numbers = #tpu.dot_dimension_numbers<[1], [0], [0], [1], [0, 0, 1, 1], [], []>} : vector<32x128xf32>, vector<128x128xf32>, vector<32x128xf32> -> vector<32x128xf32>
    %30 = vector.broadcast %3 : vector<1x128xf32> to vector<32x128xf32>
    %31 = arith.addf %29, %30 : vector<32x128xf32>
    %cst_21 = arith.constant dense<0xFF800000> : vector<32xf32>
    %32 = vector.multi_reduction <maximumf>, %31, %cst_21 [1] : vector<32x128xf32> to vector<32xf32>
    %33 = vector.shape_cast %32 : vector<32xf32> to vector<32x1xf32>
    %34 = vector.broadcast %33 : vector<32x1xf32> to vector<32x128xf32>
    %35 = arith.subf %31, %34 : vector<32x128xf32>
    %36 = math.exp %35 : vector<32x128xf32>
    %cst_22 = arith.constant dense<0.000000e+00> : vector<32xf32>
    %37 = vector.multi_reduction <add>, %36, %cst_22 [1] : vector<32x128xf32> to vector<32xf32>
    %38 = vector.shape_cast %37 : vector<32xf32> to vector<32x1xf32>
    %39 = tpu.reciprocal %38 : vector<32x1xf32> -> vector<32x1xf32>
    %40 = vector.broadcast %39 : vector<32x1xf32> to vector<32x128xf32>
    %41 = arith.mulf %36, %40 : vector<32x128xf32>
    %c0_23 = arith.constant 0 : index
    %c0_24 = arith.constant 0 : index
    %42 = vector.load %arg7[%c0_23, %c0_24] : memref<32x128xf32, #tpu.memory_space<vmem>>, vector<32x128xf32>
    tpu.vector_store %arg7[%c0_23, %c0_24], %41 {strides = array<i32>} : memref<32x128xf32, #tpu.memory_space<vmem>>, vector<32x128xf32>,
    return
  }
}

</mosaic_0001>

<bundles_post_ra>
// kernel: tpu_custom_call.1
= control target key start
LH: loop header
LB: loop body
LE: loop exit
PB: predicated region body
PF: predicated region fallthrough
CT: control target
= control target key end

     0   :  { %12 = vsyncpa [#allocation3], 0  ;;  %s983_s0 = inlined_call_operand.hbm [shape: f32[32,128], index: 0, kind: input, shape index: {}]   ;;  %s984_s1 = inlined_call_operand.hbm [shape: f32[128,128], index: 1, kind: input, shape index: {}]   ;;  %s985_s2 = inlined_call_operand.vmem [shape: f32[1,128], index: 2, kind: input, shape index: {}]   ;;  %s986_s3 = inlined_call_operand.hbm [shape: f32[128,128], index: 3, kind: input, shape index: {}]   ;;  %s987_s4 = inlined_call_operand.vmem [shape: f32[1,128], index: 4, kind: input, shape index: {}]   ;;  %s988_s5 = inlined_call_operand.hbm [shape: f32[128,128], index: 5, kind: input, shape index: {}]   ;;  %s989_s6 = inlined_call_operand.vmem [shape: f32[1,128], index: 6, kind: input, shape index: {}]   ;;  %s990_s7 = inlined_call_operand.hbm [shape: f32[32,128], index: 7, kind: output, shape index: {}]  }
   0x1   :  { %13 = vsyncpa [#allocation6], 0 }
   0x2   :  { %14 = vsyncpa [#allocation9], 0 }
   0x3   :  { %15 = vsyncpa [#allocation4], 0  ;;  %s897_s24 = smov [#allocation5]   ;;  %s898_s26 = smov [#allocation2]  }
   0x4   :  { %s33_s25 = sshll.u32 %s897_s24, 4  ;;  %s21_s27 = sshll.u32 %s898_s26, 4  ;;  %s34_s25 = int_to_ptr.vmem [resolvable:$true] %s33_s25  ;;  %s22_s27 = int_to_ptr.vmem [resolvable:$true] %s21_s27 }
   0x5   :  { %s797_s28 = scalar_lea.vmem %s34_s25, 2048  ;;  %p802_p1 = scmp.lt.s32.totalorder %s34_s25, %s34_s25 }
   0x6   :  { %p798_p0 = scmp.ne.s32.totalorder %s34_s25, %s797_s28  ;;  %p803_p2 = scmp.lt.s32.totalorder %s797_s28, %s797_s28 }
   0x8   :  { %p804_p3 = por %p803_p2, %p802_p1 }
   0xa   :  { %p805_p4 = pnand %p804_p3, %p798_p0 }
   0xc   :  { %808 = shalt.err (!%p805_p4)
}
   0xd   :  { %s899_s29 = smov 128   ;;  %s900_s30 = smov 8  }
   0xe   :  { %39 = dma.hbm_to_vmem [thread:$0]  %s984_s1, 2048, %s34_s25, [#allocation6], %s899_s29, %s899_s29, %s900_s30  }
   0xf   :  { %s817_s10 = scalar_lea.vmem %s22_s27, 512  ;;  %p822_p6 = scmp.lt.s32.totalorder %s22_s27, %s22_s27 }
  0x10   :  { %p818_p5 = scmp.ne.s32.totalorder %s22_s27, %s817_s10  ;;  %p823_p7 = scmp.lt.s32.totalorder %s817_s10, %s817_s10 }
  0x12   :  { %p824_p8 = por %p823_p7, %p822_p6 }
  0x14   :  { %p825_p9 = pnand %p824_p8, %p818_p5 }
  0x16   :  { %828 = shalt.err (!%p825_p9)
}
  0x17   :  { %27 = dma.hbm_to_vmem [thread:$0]  %s983_s0, 512, %s22_s27, [#allocation3], %s899_s29, %s899_s29, %s900_s30  }
  0x18   :  { %s901_s13 = smov [#allocation7]   ;;  %s902_s15 = smov [#allocation8]  }
  0x19   :  { %s47_s14 = sshll.u32 %s901_s13, 4  ;;  %s61_s16 = sshll.u32 %s902_s15, 4  ;;  %s48_s14 = int_to_ptr.vmem [resolvable:$true] %s47_s14  ;;  %s62_s16 = int_to_ptr.vmem [resolvable:$true] %s61_s16 }
  0x1a   :  { %s837_s1 = scalar_lea.vmem %s48_s14, 2048  ;;  %p842_p11 = scmp.lt.s32.totalorder %s48_s14, %s48_s14 }
  0x1b   :  { %p838_p10 = scmp.ne.s32.totalorder %s48_s14, %s837_s1  ;;  %p843_p12 = scmp.lt.s32.totalorder %s837_s1, %s837_s1 }
  0x1d   :  { %p844_p13 = por %p843_p12, %p842_p11 }
  0x1f   :  { %p845_p0 = pnand %p844_p13, %p838_p10 }
  0x21   :  { %848 = shalt.err (!%p845_p0)
}
  0x22   :  { %53 = dma.hbm_to_vmem [thread:$0]  %s986_s3, 2048, %s48_s14, [#allocation6], %s899_s29, %s899_s29, %s900_s30  }
  0x23   :  { %s857_s0 = scalar_lea.vmem %s62_s16, 2048  ;;  %p862_p2 = scmp.lt.s32.totalorder %s62_s16, %s62_s16 }
  0x24   :  { %p858_p1 = scmp.ne.s32.totalorder %s62_s16, %s857_s0  ;;  %p863_p3 = scmp.lt.s32.totalorder %s857_s0, %s857_s0 }
  0x26   :  { %p864_p4 = por %p863_p3, %p862_p2 }
  0x28   :  { %p865_p5 = pnand %p864_p4, %p858_p1 }
  0x2a   :  { %868 = shalt.err (!%p865_p5)
}
  0x2b   :  { %67 = dma.hbm_to_vmem [thread:$0]  %s988_s5, 2048, %s62_s16, [#allocation9], %s899_s29, %s899_s29, %s900_s30  }
  0x2c   :  { %889 = dma.done.wait [#allocation3], 512  }
  0x2d   :  { %890 = vsyncadd [#allocation3], 4294966784 }
  0x2e   :  { %891 = dma.done.wait [#allocation6], 4096  }
  0x2f   :  { %892 = vsyncadd [#allocation6], 4294963200 }
  0x30   :  { %893 = dma.done.wait [#allocation9], 2048  }
  0x31   :  { %894 = vsyncadd [#allocation9], 4294965248  ;;  %v104_v0 = vld [vmem:[#allocation5 + $0x78] sm:$0xff]  ;;  %v103_v1 = vld [vmem:[#allocation5 + $0x70] sm:$0xff] }
  0x32   :  { %588 = vmatprep.subr.mxu0 %v104_v0  ;;  %v102_v2 = vld [vmem:[#allocation5 + $0x68] sm:$0xff]  ;;  %v101_v3 = vld [vmem:[#allocation5 + $0x60] sm:$0xff]  ;;  %v100_v5 = vld [vmem:[#allocation5 + $0x58] sm:$0xff] }
  0x33   :  { %589 = vmatpush3.msra.mxu0 %v104_v0  ;;  %v82_v4 = vld [vmem:[#allocation2] sm:$0xff]  ;;  %v99_v6 = vld [vmem:[#allocation5 + $0x50] sm:$0xff]  ;;  %v98_v7 = vld [vmem:[#allocation5 + $0x48] sm:$0xff] }
  0x34   :  { %590 = vmatprep.subr.mxu0 %v103_v1  ;;  %620 = vmatprep.mubr.f32.mxu0 %v82_v4  ;;  %v97_v8 = vld [vmem:[#allocation5 + $0x40] sm:$0xff]  ;;  %v96_v9 = vld [vmem:[#allocation5 + $0x38] sm:$0xff]  ;;  %v95_v10 = vld [vmem:[#allocation5 + $0x30] sm:$0xff] }
  0x35   :  { %591 = vmatpush3.msra.mxu0 %v103_v1  ;;  %v94_v11 = vld [vmem:[#allocation5 + $0x28] sm:$0xff]  ;;  %v93_v12 = vld [vmem:[#allocation5 + $0x20] sm:$0xff]  ;;  %v92_v13 = vld [vmem:[#allocation5 + $0x18] sm:$0xff] }
  0x36   :  { %592 = vmatprep.subr.mxu0 %v102_v2  ;;  %v91_v14 = vld [vmem:[#allocation5 + $0x10] sm:$0xff]  ;;  %v90_v15 = vld [vmem:[#allocation5 + $0x8] sm:$0xff]  ;;  %v89_v16 = vld [vmem:[#allocation5] sm:$0xff] }
  0x37   :  { %593 = vmatpush3.msra.mxu0 %v102_v2  ;;  %v83_v17 = vld [vmem:[#allocation2 + $0x8] sm:$0xff]  ;;  %v84_v18 = vld [vmem:[#allocation2 + $0x10] sm:$0xff]  ;;  %v85_v19 = vld [vmem:[#allocation2 + $0x18] sm:$0xff] }
  0x38   :  { %594 = vmatprep.subr.mxu0 %v101_v3  ;;  %v239_v20 = vld [vmem:[#allocation7 + $0x78] sm:$0xff]  ;;  %v238_v21 = vld [vmem:[#allocation7 + $0x70] sm:$0xff]  ;;  %v237_v22 = vld [vmem:[#allocation7 + $0x68] sm:$0xff] }
  0x39   :  { %595 = vmatpush3.msra.mxu0 %v101_v3  ;;  %626 = vmatprep.subr.mxu1 %v239_v20  ;;  %v236_v23 = vld [vmem:[#allocation7 + $0x60] sm:$0xff]  ;;  %v235_v24 = vld [vmem:[#allocation7 + $0x58] sm:$0xff]  ;;  %v234_v25 = vld [vmem:[#allocation7 + $0x50] sm:$0xff] }
  0x3a   :  { %596 = vmatprep.subr.mxu0 %v100_v5  ;;  %627 = vmatpush3.msra.mxu1 %v239_v20  ;;  %v233_v26 = vld [vmem:[#allocation7 + $0x48] sm:$0xff]  ;;  %v232_v27 = vld [vmem:[#allocation7 + $0x40] sm:$0xff]  ;;  %v231_v28 = vld [vmem:[#allocation7 + $0x38] sm:$0xff] }
  0x3b   :  { %597 = vmatpush3.msra.mxu0 %v100_v5  ;;  %628 = vmatprep.subr.mxu1 %v238_v21  ;;  %v230_v29 = vld [vmem:[#allocation7 + $0x30] sm:$0xff]  ;;  %v229_v30 = vld [vmem:[#allocation7 + $0x28] sm:$0xff]  ;;  %v228_v31 = vld [vmem:[#allocation7 + $0x20] sm:$0xff] }
  0x3c   :  { %598 = vmatprep.subr.mxu0 %v99_v6  ;;  %629 = vmatpush3.msra.mxu1 %v238_v21  ;;  %v227_v32 = vld [vmem:[#allocation7 + $0x18] sm:$0xff]  ;;  %v226_v33 = vld [vmem:[#allocation7 + $0x10] sm:$0xff]  ;;  %v225_v34 = vld [vmem:[#allocation7 + $0x8] sm:$0xff] }
  0x3d   :  { %599 = vmatpush3.msra.mxu0 %v99_v6  ;;  %630 = vmatprep.subr.mxu1 %v237_v22  ;;  %v224_v35 = vld [vmem:[#allocation7] sm:$0xff]  ;;  %v374_v5 = vld [vmem:[#allocation8 + $0x78] sm:$0xff]  ;;  %v373_v6 = vld [vmem:[#allocation8 + $0x70] sm:$0xff] }
  0x3e   :  { %600 = vmatprep.subr.mxu0 %v98_v7  ;;  %631 = vmatpush3.msra.mxu1 %v237_v22  ;;  %v525_v36 = vld [vmem:[%s985_s2] ss:$0 sm:$0xff] }
  0x3f   :  { %601 = vmatpush3.msra.mxu0 %v98_v7  ;;  %632 = vmatprep.subr.mxu1 %v236_v23  ;;  %v372_v7 = vld [vmem:[#allocation8 + $0x68] sm:$0xff]  ;;  %v359_v20 = vld [vmem:[#allocation8] sm:$0xff] }
  0x40   :  { %602 = vmatprep.subr.mxu0 %v97_v8  ;;  %633 = vmatpush3.msra.mxu1 %v236_v23  ;;  %v526_v21 = vld [vmem:[%s987_s4] ss:$0 sm:$0xff] }
  0x41   :  { %603 = vmatpush3.msra.mxu0 %v97_v8  ;;  %634 = vmatprep.subr.mxu1 %v235_v24  ;;  %v371_v8 = vld [vmem:[#allocation8 + $0x60] sm:$0xff] }
  0x42   :  { %604 = vmatprep.subr.mxu0 %v96_v9  ;;  %635 = vmatpush3.msra.mxu1 %v235_v24 }
  0x43   :  { %605 = vmatpush3.msra.mxu0 %v96_v9  ;;  %636 = vmatprep.subr.mxu1 %v234_v25  ;;  %v370_v9 = vld [vmem:[#allocation8 + $0x58] sm:$0xff] }
  0x44   :  { %606 = vmatprep.subr.mxu0 %v95_v10  ;;  %637 = vmatpush3.msra.mxu1 %v234_v25 }
  0x45   :  { %607 = vmatpush3.msra.mxu0 %v95_v10  ;;  %638 = vmatprep.subr.mxu1 %v233_v26  ;;  %v369_v10 = vld [vmem:[#allocation8 + $0x50] sm:$0xff] }
  0x46   :  { %608 = vmatprep.subr.mxu0 %v94_v11  ;;  %639 = vmatpush3.msra.mxu1 %v233_v26 }
  0x47   :  { %609 = vmatpush3.msra.mxu0 %v94_v11  ;;  %640 = vmatprep.subr.mxu1 %v232_v27  ;;  %v368_v11 = vld [vmem:[#allocation8 + $0x48] sm:$0xff] }
  0x48   :  { %610 = vmatprep.subr.mxu0 %v93_v12  ;;  %641 = vmatpush3.msra.mxu1 %v232_v27 }
  0x49   :  { %611 = vmatpush3.msra.mxu0 %v93_v12  ;;  %642 = vmatprep.subr.mxu1 %v231_v28  ;;  %v367_v12 = vld [vmem:[#allocation8 + $0x40] sm:$0xff] }
  0x4a   :  { %612 = vmatprep.subr.mxu0 %v92_v13  ;;  %643 = vmatpush3.msra.mxu1 %v231_v28 }
  0x4b   :  { %613 = vmatpush3.msra.mxu0 %v92_v13  ;;  %644 = vmatprep.subr.mxu1 %v230_v29  ;;  %v366_v13 = vld [vmem:[#allocation8 + $0x38] sm:$0xff] }
  0x4c   :  { %614 = vmatprep.subr.mxu0 %v91_v14  ;;  %645 = vmatpush3.msra.mxu1 %v230_v29 }
  0x4d   :  { %615 = vmatpush3.msra.mxu0 %v91_v14  ;;  %646 = vmatprep.subr.mxu1 %v229_v30  ;;  %v365_v14 = vld [vmem:[#allocation8 + $0x30] sm:$0xff] }
  0x4e   :  { %616 = vmatprep.subr.mxu0 %v90_v15  ;;  %647 = vmatpush3.msra.mxu1 %v229_v30 }
  0x4f   :  { %617 = vmatpush3.msra.mxu0 %v90_v15  ;;  %648 = vmatprep.subr.mxu1 %v228_v31  ;;  %v364_v15 = vld [vmem:[#allocation8 + $0x28] sm:$0xff] }
  0x50   :  { %618 = vmatprep.subr.mxu0 %v89_v16  ;;  %649 = vmatpush3.msra.mxu1 %v228_v31 }
  0x51   :  { %619 = vmatpush3.msra.mxu0 %v89_v16  ;;  %650 = vmatprep.subr.mxu1 %v227_v32  ;;  %v363_v16 = vld [vmem:[#allocation8 + $0x20] sm:$0xff] }
  0x52   :  { %621 = vmatmul.mubr.f32.vlgmr.msra.gmra.mxu0 %v83_v17  ;;  %651 = vmatpush3.msra.mxu1 %v227_v32  ;;  %v362_v17 = vld [vmem:[#allocation8 + $0x18] sm:$0xff] }
  0x53   :  { %623 = vmatprep.mubr.f32.mxu0 %v84_v18  ;;  %652 = vmatprep.subr.mxu1 %v226_v33  ;;  %v361_v18 = vld [vmem:[#allocation8 + $0x10] sm:$0xff] }
  0x54   :  { %653 = vmatpush3.msra.mxu1 %v226_v33  ;;  %664 = vmatprep.subr.mxu0 %v374_v5 }
  0x55   :  { %654 = vmatprep.subr.mxu1 %v225_v34  ;;  %665 = vmatpush3.msra.mxu0 %v374_v5 }
  0x56   :  { %624 = vmatmul.mubr.f32.gmra.mxu0 %v85_v19  ;;  %655 = vmatpush3.msra.mxu1 %v225_v34  ;;  %v360_v19 = vld [vmem:[#allocation8 + $0x8] sm:$0xff] }
  0x57   :  { %656 = vmatprep.subr.mxu1 %v224_v35  ;;  %666 = vmatprep.subr.mxu0 %v373_v6 }
  0x58   :  { %657 = vmatpush3.msra.mxu1 %v224_v35  ;;  %667 = vmatpush3.msra.mxu0 %v373_v6 }
  0x59   :  { %702 = vmatprep.subr.mxu1 %v374_v5  ;;  %668 = vmatprep.subr.mxu0 %v372_v7 }
  0x5a   :  { %669 = vmatpush3.msra.mxu0 %v372_v7 }
  0x5b   :  { %670 = vmatprep.subr.mxu0 %v371_v8 }
  0x5c   :  { %671 = vmatpush3.msra.mxu0 %v371_v8 }
  0x5d   :  { %672 = vmatprep.subr.mxu0 %v370_v9 }
  0x5e   :  { %673 = vmatpush3.msra.mxu0 %v370_v9 }
  0x5f   :  { %674 = vmatprep.subr.mxu0 %v369_v10 }
  0x60   :  { %675 = vmatpush3.msra.mxu0 %v369_v10 }
  0x61   :  { %676 = vmatprep.subr.mxu0 %v368_v11 }
  0x62   :  { %677 = vmatpush3.msra.mxu0 %v368_v11 }
  0x63   :  { %678 = vmatprep.subr.mxu0 %v367_v12 }
  0x64   :  { %679 = vmatpush3.msra.mxu0 %v367_v12 }
  0x65   :  { %680 = vmatprep.subr.mxu0 %v366_v13 }
  0x66   :  { %681 = vmatpush3.msra.mxu0 %v366_v13 }
  0x67   :  { %682 = vmatprep.subr.mxu0 %v365_v14 }
  0x68   :  { %683 = vmatpush3.msra.mxu0 %v365_v14 }
  0x69   :  { %684 = vmatprep.subr.mxu0 %v364_v15 }
  0x6a   :  { %685 = vmatpush3.msra.mxu0 %v364_v15 }
  0x6b   :  { %686 = vmatprep.subr.mxu0 %v363_v16 }
  0x6c   :  { %687 = vmatpush3.msra.mxu0 %v363_v16 }
  0x6d   :  { %688 = vmatprep.subr.mxu0 %v362_v17 }
  0x6e   :  { %689 = vmatpush3.msra.mxu0 %v362_v17 }
  0x6f   :  { %690 = vmatprep.subr.mxu0 %v361_v18 }
  0x70   :  { %691 = vmatpush3.msra.mxu0 %v361_v18 }
  0x71   :  { %692 = vmatprep.subr.mxu0 %v360_v19 }
  0x72   :  { %693 = vmatpush3.msra.mxu0 %v360_v19 }
  0x73   :  { %694 = vmatprep.subr.mxu0 %v359_v20 }
  0x74   :  { %695 = vmatpush3.msra.mxu0 %v359_v20 }
 0x112   :  { %v622_v37 = vpop.f32.mrf.mxu0 }
 0x113   :  { %v183_v38 = vadd.f32 %v622_v37, %v525_v36 }
 0x114   :  { %v177_v39 = vpop.f32.mrf.mxu0 }
 0x115   :  { %v197_v40 = vsub.f32 0.0, %v183_v38  ;;  %v178_v41 = vadd.f32 %v525_v36, %v177_v39 }
 0x116   :  { %v625_v42 = vpop.f32.mrf.mxu0 }
 0x117   :  { %v202_v43 = vmul.f32 1.442695, %v197_v40  ;;  %v196_v44 = vsub.f32 0.0, %v178_v41  ;;  %v193_v45 = vadd.f32 %v625_v42, %v525_v36 }
 0x118   :  { %v187_v46 = vpop.f32.mrf.mxu0 }
 0x119   :  { %741 = vpow2.f32 %v202_v43  ;;  %v200_v47 = vmul.f32 1.442695, %v196_v44  ;;  %v199_v48 = vsub.f32 0.0, %v193_v45  ;;  %v188_v49 = vadd.f32 %v525_v36, %v187_v46 }
 0x11b   :  { %743 = vpow2.f32 %v200_v47  ;;  %v206_v50 = vmul.f32 1.442695, %v199_v48  ;;  %v198_v51 = vsub.f32 0.0, %v188_v49 }
 0x11d   :  { %745 = vpow2.f32 %v206_v50  ;;  %v204_v52 = vmul.f32 1.442695, %v198_v51 }
 0x11f   :  { %747 = vpow2.f32 %v204_v52 }
 0x126   :  { %v742_v53 = vpop.eup %741 }
 0x127   :  { %v209_v54 = vadd.f32 1.0, %v742_v53 }
 0x128   :  { %v744_v55 = vpop.eup %743 }
 0x129   :  { %v208_v56 = vadd.f32 1.0, %v744_v55  ;;  %749 = vrcp.f32 %v209_v54  ;;  %v527_v55 = vld [vmem:[%s989_s6] ss:$0 sm:$0xff]  ;;  %s903_s6 = smov [#allocation10]  }
 0x12a   :  { %v746_v57 = vpop.eup %745  ;;  %s511_s23 = sshll.u32 %s903_s6, 4  ;;  %s512_s23 = int_to_ptr.vmem [resolvable:$true] %s511_s23 }
 0x12b   :  { %751 = vrcp.f32 %v208_v56  ;;  %v211_v58 = vadd.f32 1.0, %v746_v57  ;;  %s869_s24 = scalar_lea.vmem %s512_s23, 512  ;;  %p874_p7 = scmp.lt.s32.totalorder %s512_s23, %s512_s23 }
 0x12c   :  { %v748_v59 = vpop.eup %747  ;;  %p870_p6 = scmp.ne.s32.totalorder %s512_s23, %s869_s24  ;;  %p875_p8 = scmp.lt.s32.totalorder %s869_s24, %s869_s24 }
 0x12d   :  { %v210_v60 = vadd.f32 1.0, %v748_v59  ;;  %753 = vrcp.f32 %v211_v58 }
 0x12e   :  { %p876_p9 = por %p875_p8, %p874_p7 }
 0x12f   :  { %755 = vrcp.f32 %v210_v60 }
 0x130   :  { %p877_p10 = pnand %p876_p9, %p870_p6 }
 0x136   :  { %v750_v61 = vpop.eup %749 }
 0x137   :  { %v221_v0 = vmul.f32 %v750_v61, %v183_v38 }
 0x138   :  { %v752_v62 = vpop.eup %751 }
 0x139   :  { %v220_v63 = vmul.f32 %v752_v62, %v178_v41 }
 0x13a   :  { %v754_v1 = vpop.eup %753 }
 0x13b   :  { %658 = vmatprep.mubr.f32.mxu1 %v220_v63  ;;  %v223_v4 = vmul.f32 %v754_v1, %v193_v45 }
 0x13c   :  { %v756_v2 = vpop.eup %755  ;;  %659 = vmatmul.mubr.f32.vlgmr.msra.gmra.mxu1 %v221_v0 }
 0x13d   :  { %v222_v3 = vmul.f32 %v756_v2, %v188_v49  ;;  %718 = vmatpush3.msra.mxu1 %v374_v5 }
 0x13e   :  { %703 = vmatprep.subr.mxu1 %v373_v6 }
 0x13f   :  { %661 = vmatprep.mubr.f32.mxu1 %v222_v3  ;;  %719 = vmatpush3.msra.mxu1 %v373_v6 }
 0x140   :  { %662 = vmatmul.mubr.f32.gmra.mxu1 %v223_v4  ;;  %704 = vmatprep.subr.mxu1 %v372_v7 }
 0x141   :  { %720 = vmatpush3.msra.mxu1 %v372_v7 }
 0x142   :  { %705 = vmatprep.subr.mxu1 %v371_v8 }
 0x143   :  { %721 = vmatpush3.msra.mxu1 %v371_v8 }
 0x144   :  { %706 = vmatprep.subr.mxu1 %v370_v9 }
 0x145   :  { %722 = vmatpush3.msra.mxu1 %v370_v9 }
 0x146   :  { %707 = vmatprep.subr.mxu1 %v369_v10 }
 0x147   :  { %723 = vmatpush3.msra.mxu1 %v369_v10 }
 0x148   :  { %708 = vmatprep.subr.mxu1 %v368_v11 }
 0x149   :  { %724 = vmatpush3.msra.mxu1 %v368_v11 }
 0x14a   :  { %709 = vmatprep.subr.mxu1 %v367_v12 }
 0x14b   :  { %725 = vmatpush3.msra.mxu1 %v367_v12 }
 0x14c   :  { %710 = vmatprep.subr.mxu1 %v366_v13 }
 0x14d   :  { %726 = vmatpush3.msra.mxu1 %v366_v13 }
 0x14e   :  { %711 = vmatprep.subr.mxu1 %v365_v14 }
 0x14f   :  { %727 = vmatpush3.msra.mxu1 %v365_v14 }
 0x150   :  { %712 = vmatprep.subr.mxu1 %v364_v15 }
 0x151   :  { %728 = vmatpush3.msra.mxu1 %v364_v15 }
 0x152   :  { %713 = vmatprep.subr.mxu1 %v363_v16 }
 0x153   :  { %729 = vmatpush3.msra.mxu1 %v363_v16 }
 0x154   :  { %714 = vmatprep.subr.mxu1 %v362_v17 }
 0x155   :  { %730 = vmatpush3.msra.mxu1 %v362_v17 }
 0x156   :  { %715 = vmatprep.subr.mxu1 %v361_v18 }
 0x157   :  { %731 = vmatpush3.msra.mxu1 %v361_v18 }
 0x158   :  { %716 = vmatprep.subr.mxu1 %v360_v19 }
 0x159   :  { %732 = vmatpush3.msra.mxu1 %v360_v19 }
 0x15a   :  { %717 = vmatprep.subr.mxu1 %v359_v20 }
 0x15b   :  { %733 = vmatpush3.msra.mxu1 %v359_v20 }
 0x1fc   :  { %v660_v22 = vpop.f32.mrf.mxu1 }
 0x1fd   :  { %v318_v23 = vadd.f32 %v660_v22, %v526_v21 }
 0x1fe   :  { %v312_v24 = vpop.f32.mrf.mxu1 }
 0x1ff   :  { %v332_v25 = vsub.f32 0.0, %v318_v23  ;;  %v313_v26 = vadd.f32 %v526_v21, %v312_v24 }
 0x200   :  { %v663_v27 = vpop.f32.mrf.mxu1 }
 0x201   :  { %v337_v28 = vmul.f32 1.442695, %v332_v25  ;;  %v331_v29 = vsub.f32 0.0, %v313_v26  ;;  %v328_v30 = vadd.f32 %v663_v27, %v526_v21 }
 0x202   :  { %v322_v31 = vpop.f32.mrf.mxu1 }
 0x203   :  { %757 = vpow2.f32 %v337_v28  ;;  %v335_v32 = vmul.f32 1.442695, %v331_v29  ;;  %v334_v33 = vsub.f32 0.0, %v328_v30  ;;  %v323_v34 = vadd.f32 %v526_v21, %v322_v31 }
 0x205   :  { %759 = vpow2.f32 %v335_v32  ;;  %v341_v35 = vmul.f32 1.442695, %v334_v33  ;;  %v333_v36 = vsub.f32 0.0, %v323_v34 }
 0x207   :  { %761 = vpow2.f32 %v341_v35  ;;  %v339_v37 = vmul.f32 1.442695, %v333_v36 }
 0x209   :  { %763 = vpow2.f32 %v339_v37 }
 0x210   :  { %v758_v38 = vpop.eup %757 }
 0x211   :  { %v344_v39 = vadd.f32 1.0, %v758_v38 }
 0x212   :  { %v760_v40 = vpop.eup %759 }
 0x213   :  { %v343_v41 = vadd.f32 1.0, %v760_v40  ;;  %765 = vrcp.f32 %v344_v39 }
 0x214   :  { %v762_v42 = vpop.eup %761 }
 0x215   :  { %767 = vrcp.f32 %v343_v41  ;;  %v346_v43 = vadd.f32 1.0, %v762_v42 }
 0x216   :  { %v764_v44 = vpop.eup %763 }
 0x217   :  { %v345_v45 = vadd.f32 1.0, %v764_v44  ;;  %769 = vrcp.f32 %v346_v43 }
 0x219   :  { %771 = vrcp.f32 %v345_v45 }
 0x220   :  { %v766_v46 = vpop.eup %765 }
 0x221   :  { %v356_v49 = vmul.f32 %v766_v46, %v318_v23 }
 0x222   :  { %v768_v47 = vpop.eup %767 }
 0x223   :  { %v355_v48 = vmul.f32 %v768_v47, %v313_v26 }
 0x224   :  { %v770_v50 = vpop.eup %769 }
 0x225   :  { %696 = vmatprep.mubr.f32.mxu0 %v355_v48  ;;  %v358_v53 = vmul.f32 %v770_v50, %v328_v30 }
 0x226   :  { %v772_v51 = vpop.eup %771  ;;  %697 = vmatmul.mubr.f32.vlgmr.msra.gmra.mxu0 %v356_v49 }
 0x227   :  { %v357_v52 = vmul.f32 %v772_v51, %v323_v34 }
 0x229   :  { %699 = vmatprep.mubr.f32.mxu1 %v357_v52 }
 0x22a   :  { %700 = vmatmul.mubr.f32.vlgmr.msra.gmra.mxu1 %v358_v53 }
 0x2e6   :  { %v698_v54 = vpop.f32.mrf.mxu0 }
 0x2e7   :  { %v453_v60 = vadd.f32 %v698_v54, %v527_v55 }
 0x2e8   :  { %v447_v56 = vpop.f32.mrf.mxu0 }
 0x2e9   :  { %v448_v57 = vadd.f32 %v527_v55, %v447_v56 }
 0x2ea   :  { %v701_v58 = vpop.f32.mrf.mxu1 }
 0x2eb   :  { %466 = vmax.xlane.f32.xlu0 %v448_v57  ;;  %v463_v62 = vadd.f32 %v701_v58, %v527_v55 }
 0x2ec   :  { %v457_v59 = vpop.f32.mrf.mxu1 }
 0x2ed   :  { %v458_v61 = vadd.f32 %v527_v55, %v457_v59 }
 0x2ef   :  { %470 = vmax.xlane.f32.xlu1 %v458_v61  ;;  %468 = vmax.xlane.f32.xlu0 %v453_v60 }
 0x2f3   :  { %472 = vmax.xlane.f32.xlu1 %v463_v62 }
 0x374   :  { %v467_v63 = vpop.xlane.xlu0 %466 }
 0x375   :  { %v474_v0 = vsub.f32 %v448_v57, %v467_v63 }
 0x377   :  { %v478_v1 = vmul.f32 1.442695, %v474_v0 }
 0x378   :  { %v471_v2 = vpop.xlane.xlu1 %470  ;;  %v469_v3 = vpop.xlane.xlu0 %468 }
 0x379   :  { %773 = vpow2.f32 %v478_v1  ;;  %v476_v4 = vsub.f32 %v458_v61, %v471_v2  ;;  %v475_v5 = vsub.f32 %v453_v60, %v469_v3 }
 0x37b   :  { %v482_v6 = vmul.f32 1.442695, %v476_v4  ;;  %v480_v7 = vmul.f32 1.442695, %v475_v5 }
 0x37c   :  { %v473_v8 = vpop.xlane.xlu1 %472 }
 0x37d   :  { %775 = vpow2.f32 %v482_v6  ;;  %v477_v9 = vsub.f32 %v463_v62, %v473_v8 }
 0x37e   :  { %777 = vpow2.f32 %v480_v7 }
 0x37f   :  { %v484_v10 = vmul.f32 1.442695, %v477_v9 }
 0x381   :  { %779 = vpow2.f32 %v484_v10 }
 0x386   :  { %v774_v11 = vpop.eup %773 }
 0x387   :  { %486 = vadd.xlane.f32.xlu0 %v774_v11 }
 0x38a   :  { %v776_v12 = vpop.eup %775 }
 0x38b   :  { %v778_v13 = vpop.eup %777  ;;  %490 = vadd.xlane.f32.xlu0 %v776_v12 }
 0x38c   :  { %488 = vadd.xlane.f32.xlu1 %v778_v13 }
 0x38e   :  { %v780_v14 = vpop.eup %779 }
 0x390   :  { %492 = vadd.xlane.f32.xlu1 %v780_v14 }
 0x410   :  { %v487_v15 = vpop.xlane.xlu0 %486 }
 0x411   :  { %781 = vrcp.f32 %v487_v15 }
 0x414   :  { %v491_v16 = vpop.xlane.xlu0 %490 }
 0x415   :  { %v489_v17 = vpop.xlane.xlu1 %488  ;;  %783 = vrcp.f32 %v491_v16 }
 0x416   :  { %785 = vrcp.f32 %v489_v17 }
 0x419   :  { %v493_v18 = vpop.xlane.xlu1 %492 }
 0x41a   :  { %787 = vrcp.f32 %v493_v18 }
 0x41e   :  { %v782_v19 = vpop.eup %781 }
 0x41f   :  { %v498_v20 = vmul.f32 %v782_v19, %v774_v11 }
 0x421   :  { %502 = vst [vmem:[#allocation10] sm:$0xff] %v498_v20 }
 0x422   :  { %v784_v21 = vpop.eup %783 }
 0x423   :  { %v786_v22 = vpop.eup %785  ;;  %v500_v23 = vmul.f32 %v784_v21, %v776_v12 }
 0x424   :  { %v499_v24 = vmul.f32 %v786_v22, %v778_v13 }
 0x425   :  { %504 = vst [vmem:[#allocation10 + $0x10] sm:$0xff] %v500_v23 }
 0x426   :  { %503 = vst [vmem:[#allocation10 + $0x8] sm:$0xff] %v499_v24 }
 0x427   :  { %v788_v25 = vpop.eup %787 }
 0x428   :  { %v501_v26 = vmul.f32 %v788_v25, %v780_v14 }
 0x42a   :  { %505 = vst [vmem:[#allocation10 + $0x18] sm:$0xff] %v501_v26 }
 0x42b   :  { %880 = shalt.err (!%p877_p10)
}
 0x42c   :  { %517 = dma.vmem_to_hbm [thread:$0]  %s512_s23, 512, %s990_s7, [#allocation4], %s899_s29, %s899_s29, %s900_s30  }
 0x42d   :  { %895 = dma.done.wait [#allocation4], 512  }
 0x42e   :  { %896 = vsyncadd [#allocation4], 4294966784 }
 0x42f   :  { %521 = vsyncpa [#allocation3], 1 }
 0x430   :  { %522 = vsyncpa [#allocation6], 1 }
 0x431   :  { %523 = vsyncpa [#allocation9], 1 }
 0x432   :  { %524 = vsyncpa [#allocation4], 1 }

</bundles_post_ra>
